<compile_context>
chip_gen: v5e
topology: v5e:2x2
jax: 0.10.0
libtpu: 0.0.40
codegen_flags: <defaults>
</compile_context>

<pallas_src>
import functools

import jax
import jax.numpy as jnp
from jax import lax
from jax.experimental import pallas as pl
from jax.experimental.pallas import tpu as pltpu  # noqa: F401  (TPU backend)

# ----- model hyperparameters (small demo sizes, same structure as the module) -----
N_EMBD = 32          # torch code uses 384; scaled down for the demo
NUM_HEADS = 4
HEAD_SIZE = N_EMBD // NUM_HEADS   # 8
B = 2                # batch
T = 8                # sequence length (<= block_size of the module)

NEG_BIG = -1e30      # large finite negative for masking (NaN-robust vs -inf)


# ------------------------- fused Pallas kernel -------------------------

def _mha_fused_kernel(x_ref, wqkv_ref, wproj_ref, bproj_ref, o_ref,
                      *, num_heads, batch, seq):
    """Single invocation: fused QKV proj for the whole (B*T) slab, then a
    static loop over batch for per-head causal attention and the output
    projection (accumulated as per-head partial projections)."""
    c = x_ref.shape[-1]
    hs = c // num_heads
    t = seq

    # Fused Q/K/V projection for ALL batches and heads in one lane-dense matmul.
    # Scale C**-0.5 is already folded into the Q columns of wqkv.
    qkv = jnp.dot(x_ref[...], wqkv_ref[...],
                  preferred_element_type=jnp.float32)          # (B*T, 3C)

    # Causal mask: built once per kernel invocation.
    row = lax.broadcasted_iota(jnp.int32, (t, t), 0)
    col = lax.broadcasted_iota(jnp.int32, (t, t), 1)
    causal = row >= col

    wp = wproj_ref[...]                                        # (C, C)
    bias_row = bproj_ref[...]                                  # (1, C)

    for b in range(batch):                                     # static, B=2
        r0 = b * t
        q_b = qkv[r0:r0 + t, 0 * c:1 * c]                      # (T, C), pre-scaled
        k_b = qkv[r0:r0 + t, 1 * c:2 * c]
        v_b = qkv[r0:r0 + t, 2 * c:3 * c]

        # Accumulate cat(heads) @ Wp as sum of per-head partial projections;
        # every matmul output stays full lane width (C), no lane-concat.
        y = jnp.broadcast_to(bias_row, (t, c)).astype(jnp.float32)

        for h in range(num_heads):                             # static, H=4
            lo, hi = h * hs, (h + 1) * hs
            q_h = q_b[:, lo:hi]                                # (T, hs)
            k_h = k_b[:, lo:hi]
            v_h = v_b[:, lo:hi]

            # q @ k^T without materializing k^T (contract dim 1 with dim 1).
            scores = lax.dot_general(
                q_h, k_h, (((1,), (1,)), ((), ())),
                preferred_element_type=jnp.float32)            # (T, T)
            scores = jnp.where(causal, scores, NEG_BIG)

            m = jnp.max(scores, axis=-1, keepdims=True)
            e = jnp.exp(scores - m)
            denom = jnp.sum(e, axis=-1, keepdims=True)
            w = e * pl.reciprocal(denom, approx=True)          # softmax (EUP recip)

            out_h = jnp.dot(w, v_h,
                            preferred_element_type=jnp.float32)  # (T, hs)
            y = y + jnp.dot(out_h, wp[lo:hi, :],
                            preferred_element_type=jnp.float32)  # (T, C)

        o_ref[r0:r0 + t, :] = y.astype(o_ref.dtype)            # lane-dense slab store


# ------------------------- one-time parameter preparation -------------------------

def prepare_mha_params(wq, wk, wv, w_proj, b_proj):
    """One-time weight fusion (hoisted out of the forward hot path).

    wq/wk/wv: (num_heads, C, head_size)  -- pre-transposed nn.Linear weights
    Returns (wqkv, w_proj, b_proj) with:
      wqkv: (C, 3C), columns [0,C)=Q (head-major, scale folded in),
            [C,2C)=K, [2C,3C)=V.
    """
    H, C, hs = wq.shape
    scale = float(C) ** -0.5                       # C**-0.5 with C = n_embd (as in torch)

    def _fuse(w):                                  # (H, C, hs) -> (C, H*hs)
        return jnp.transpose(w, (1, 0, 2)).reshape(C, H * hs)

    wqkv = jnp.concatenate([_fuse(wq) * scale, _fuse(wk), _fuse(wv)], axis=1)  # (C, 3C)
    return wqkv, w_proj, b_proj


# ------------------------- forward wrapper (hot path) -------------------------

def multi_head_attention(x, wqkv, w_proj, b_proj, *, num_heads):
    """
    x:      (B, T, C)
    wqkv:   (C, 3C)   -- from prepare_mha_params (scale folded into Q columns)
    w_proj: (C, C)    -- pre-transposed Linear weight
    b_proj: (1, C)
    returns (B, T, C)
    """
    Bsz, Tlen, C = x.shape
    x2d = x.reshape(Bsz * Tlen, C)                 # free layout-preserving reshape

    kernel = functools.partial(_mha_fused_kernel,
                               num_heads=num_heads, batch=Bsz, seq=Tlen)

    out2d = pl.pallas_call(
        kernel,
        out_shape=jax.ShapeDtypeStruct((Bsz * Tlen, C), x.dtype),
        # No grid: the whole working set (~20 KiB) lives in VMEM for one step.
    )(x2d, wqkv, w_proj, b_proj)

    return out2d.reshape(Bsz, Tlen, C)


# ------------------------- pure-JAX reference -------------------------

def _reference(x, wq, wk, wv, w_proj, b_proj):
    """Pure-JAX reference of the PyTorch forward (eval mode)."""
    Bsz, Tlen, C = x.shape
    scale = float(C) ** -0.5
    outs = []
    for h in range(wq.shape[0]):
        q = x @ wq[h]
        k = x @ wk[h]
        v = x @ wv[h]
        wei = (q @ jnp.swapaxes(k, -2, -1)) * scale
        tril = jnp.tril(jnp.ones((Tlen, Tlen)))
        wei = jnp.where(tril == 0, -jnp.inf, wei)
        wei = jax.nn.softmax(wei, axis=-1)
        outs.append(wei @ v)
    cat = jnp.concatenate(outs, axis=-1)
    return cat @ w_proj + b_proj


if __name__ == "__main__":
    key = jax.random.PRNGKey(0)
    kx, kq, kk, kv, kp, kb = jax.random.split(key, 6)

    x = jax.random.normal(kx, (B, T, N_EMBD), dtype=jnp.float32)
    # deterministic parameter init (synthetic weights, not a checkpoint)
    wq = jax.random.normal(kq, (NUM_HEADS, N_EMBD, HEAD_SIZE), dtype=jnp.float32) * 0.1
    wk = jax.random.normal(kk, (NUM_HEADS, N_EMBD, HEAD_SIZE), dtype=jnp.float32) * 0.1
    wv = jax.random.normal(kv, (NUM_HEADS, N_EMBD, HEAD_SIZE), dtype=jnp.float32) * 0.1
    w_proj = jax.random.normal(kp, (N_EMBD, N_EMBD), dtype=jnp.float32) * 0.1
    b_proj = jax.random.normal(kb, (1, N_EMBD), dtype=jnp.float32) * 0.1

    # One-time weight prep (outside the hot path).
    wqkv, w_proj_p, b_proj_p = prepare_mha_params(wq, wk, wv, w_proj, b_proj)
    wqkv = jax.block_until_ready(wqkv)

    out = multi_head_attention(x, wqkv, w_proj_p, b_proj_p, num_heads=NUM_HEADS)
    out = jax.block_until_ready(out)

    ref = _reference(x, wq, wk, wv, w_proj, b_proj)
    assert out.shape == (B, T, N_EMBD)
    # slightly relaxed tolerance: approx EUP reciprocal in the softmax denom
    assert jnp.allclose(out, ref, atol=2e-3, rtol=2e-3), "mismatch vs reference"

    print("KERNEL_OK")
</pallas_src>

<mosaic_0001>
module attributes {stable_mosaic.version = 11 : i64} {
  func.func @_mha_fused_kernel(%arg0: memref<16x32xf32, #tpu.memory_space<vmem>>, %arg1: memref<32x96xf32, #tpu.memory_space<vmem>>, %arg2: memref<32x32xf32, #tpu.memory_space<vmem>>, %arg3: memref<1x32xf32, #tpu.memory_space<vmem>>, %arg4: memref<16x32xf32, #tpu.memory_space<vmem>>) attributes {dimension_semantics = [], scalar_prefetch = 0 : i64, scratch_operands = 0 : i64, tpu.core_type = #tpu.core_type<tc>} {
    %c0 = arith.constant 0 : index
    %c0_0 = arith.constant 0 : index
    %0 = vector.load %arg0[%c0, %c0_0] : memref<16x32xf32, #tpu.memory_space<vmem>>, vector<16x32xf32>
    %c0_1 = arith.constant 0 : index
    %c0_2 = arith.constant 0 : index
    %1 = vector.load %arg1[%c0_1, %c0_2] : memref<32x96xf32, #tpu.memory_space<vmem>>, vector<32x96xf32>
    %cst = arith.constant dense<0.000000e+00> : vector<16x96xf32>
    %2 = tpu.matmul %0, %1, %cst {dimension_numbers = #tpu.dot_dimension_numbers<[1], [0], [0], [1], [0, 0, 1, 1], [], []>} : vector<16x32xf32>, vector<32x96xf32>, vector<16x96xf32> -> vector<16x96xf32>
    %3 = tpu.iota {dimensions = array<i32: 0>} : vector<8x8xi32>
    %4 = tpu.iota {dimensions = array<i32: 1>} : vector<8x8xi32>
    %5 = arith.cmpi sge, %3, %4 : vector<8x8xi32>
    %c0_3 = arith.constant 0 : index
    %c0_4 = arith.constant 0 : index
    %6 = vector.load %arg2[%c0_3, %c0_4] : memref<32x32xf32, #tpu.memory_space<vmem>>, vector<32x32xf32>
    %c0_5 = arith.constant 0 : index
    %c0_6 = arith.constant 0 : index
    %7 = vector.load %arg3[%c0_5, %c0_6] : memref<1x32xf32, #tpu.memory_space<vmem>>, vector<1x32xf32>
    %8 = vector.extract_strided_slice %2 {offsets = [0, 0], sizes = [8, 32], strides = [1, 1]} : vector<16x96xf32> to vector<8x32xf32>
    %9 = vector.extract_strided_slice %2 {offsets = [0, 32], sizes = [8, 32], strides = [1, 1]} : vector<16x96xf32> to vector<8x32xf32>
    %10 = vector.extract_strided_slice %2 {offsets = [0, 64], sizes = [8, 32], strides = [1, 1]} : vector<16x96xf32> to vector<8x32xf32>
    %11 = vector.shape_cast %7 : vector<1x32xf32> to vector<1x32xf32>
    %12 = vector.broadcast %11 : vector<1x32xf32> to vector<8x32xf32>
    %13 = vector.extract_strided_slice %8 {offsets = [0, 0], sizes = [8, 8], strides = [1, 1]} : vector<8x32xf32> to vector<8x8xf32>
    %14 = vector.extract_strided_slice %9 {offsets = [0, 0], sizes = [8, 8], strides = [1, 1]} : vector<8x32xf32> to vector<8x8xf32>
    %15 = vector.extract_strided_slice %10 {offsets = [0, 0], sizes = [8, 8], strides = [1, 1]} : vector<8x32xf32> to vector<8x8xf32>
    %cst_7 = arith.constant dense<0.000000e+00> : vector<8x8xf32>
    %16 = tpu.matmul %13, %14, %cst_7 {dimension_numbers = #tpu.dot_dimension_numbers<[1], [1], [0], [0], [0, 0, 1, 0], [], []>} : vector<8x8xf32>, vector<8x8xf32>, vector<8x8xf32> -> vector<8x8xf32>
    %cst_8 = arith.constant -1.000000e+30 : f32
    %17 = vector.broadcast %cst_8 : f32 to vector<8x8xf32>
    %18 = arith.select %5, %16, %17 : vector<8x8xi1>, vector<8x8xf32>
    %cst_9 = arith.constant dense<0xFF800000> : vector<8xf32>
    %19 = vector.multi_reduction <maximumf>, %18, %cst_9 [1] : vector<8x8xf32> to vector<8xf32>
    %20 = vector.shape_cast %19 : vector<8xf32> to vector<8x1xf32>
    %21 = vector.broadcast %20 : vector<8x1xf32> to vector<8x8xf32>
    %22 = arith.subf %18, %21 : vector<8x8xf32>
    %23 = math.exp %22 : vector<8x8xf32>
    %cst_10 = arith.constant dense<0.000000e+00> : vector<8xf32>
    %24 = vector.multi_reduction <add>, %23, %cst_10 [1] : vector<8x8xf32> to vector<8xf32>
    %25 = vector.shape_cast %24 : vector<8xf32> to vector<8x1xf32>
    %26 = tpu.reciprocal %25 {approx = true} : vector<8x1xf32> -> vector<8x1xf32>
    %27 = vector.broadcast %26 : vector<8x1xf32> to vector<8x8xf32>
    %28 = arith.mulf %23, %27 : vector<8x8xf32>
    %cst_11 = arith.constant dense<0.000000e+00> : vector<8x8xf32>
    %29 = tpu.matmul %28, %15, %cst_11 {dimension_numbers = #tpu.dot_dimension_numbers<[1], [0], [0], [1], [0, 0, 1, 1], [], []>} : vector<8x8xf32>, vector<8x8xf32>, vector<8x8xf32> -> vector<8x8xf32>
    %30 = vector.extract_strided_slice %6 {offsets = [0, 0], sizes = [8, 32], strides = [1, 1]} : vector<32x32xf32> to vector<8x32xf32>
    %cst_12 = arith.constant dense<0.000000e+00> : vector<8x32xf32>
    %31 = tpu.matmul %29, %30, %cst_12 {dimension_numbers = #tpu.dot_dimension_numbers<[1], [0], [0], [1], [0, 0, 1, 1], [], []>} : vector<8x8xf32>, vector<8x32xf32>, vector<8x32xf32> -> vector<8x32xf32>
    %32 = arith.addf %12, %31 : vector<8x32xf32>
    %33 = vector.extract_strided_slice %8 {offsets = [0, 8], sizes = [8, 8], strides = [1, 1]} : vector<8x32xf32> to vector<8x8xf32>
    %34 = vector.extract_strided_slice %9 {offsets = [0, 8], sizes = [8, 8], strides = [1, 1]} : vector<8x32xf32> to vector<8x8xf32>
    %35 = vector.extract_strided_slice %10 {offsets = [0, 8], sizes = [8, 8], strides = [1, 1]} : vector<8x32xf32> to vector<8x8xf32>
    %cst_13 = arith.constant dense<0.000000e+00> : vector<8x8xf32>
    %36 = tpu.matmul %33, %34, %cst_13 {dimension_numbers = #tpu.dot_dimension_numbers<[1], [1], [0], [0], [0, 0, 1, 0], [], []>} : vector<8x8xf32>, vector<8x8xf32>, vector<8x8xf32> -> vector<8x8xf32>
    %cst_14 = arith.constant -1.000000e+30 : f32
    %37 = vector.broadcast %cst_14 : f32 to vector<8x8xf32>
    %38 = arith.select %5, %36, %37 : vector<8x8xi1>, vector<8x8xf32>
    %cst_15 = arith.constant dense<0xFF800000> : vector<8xf32>
    %39 = vector.multi_reduction <maximumf>, %38, %cst_15 [1] : vector<8x8xf32> to vector<8xf32>
    %40 = vector.shape_cast %39 : vector<8xf32> to vector<8x1xf32>
    %41 = vector.broadcast %40 : vector<8x1xf32> to vector<8x8xf32>
    %42 = arith.subf %38, %41 : vector<8x8xf32>
    %43 = math.exp %42 : vector<8x8xf32>
    %cst_16 = arith.constant dense<0.000000e+00> : vector<8xf32>
    %44 = vector.multi_reduction <add>, %43, %cst_16 [1] : vector<8x8xf32> to vector<8xf32>
    %45 = vector.shape_cast %44 : vector<8xf32> to vector<8x1xf32>
    %46 = tpu.reciprocal %45 {approx = true} : vector<8x1xf32> -> vector<8x1xf32>
    %47 = vector.broadcast %46 : vector<8x1xf32> to vector<8x8xf32>
    %48 = arith.mulf %43, %47 : vector<8x8xf32>
    %cst_17 = arith.constant dense<0.000000e+00> : vector<8x8xf32>
    %49 = tpu.matmul %48, %35, %cst_17 {dimension_numbers = #tpu.dot_dimension_numbers<[1], [0], [0], [1], [0, 0, 1, 1], [], []>} : vector<8x8xf32>, vector<8x8xf32>, vector<8x8xf32> -> vector<8x8xf32>
    %50 = vector.extract_strided_slice %6 {offsets = [8, 0], sizes = [8, 32], strides = [1, 1]} : vector<32x32xf32> to vector<8x32xf32>
    %cst_18 = arith.constant dense<0.000000e+00> : vector<8x32xf32>
    %51 = tpu.matmul %49, %50, %cst_18 {dimension_numbers = #tpu.dot_dimension_numbers<[1], [0], [0], [1], [0, 0, 1, 1], [], []>} : vector<8x8xf32>, vector<8x32xf32>, vector<8x32xf32> -> vector<8x32xf32>
    %52 = arith.addf %32, %51 : vector<8x32xf32>
    %53 = vector.extract_strided_slice %8 {offsets = [0, 16], sizes = [8, 8], strides = [1, 1]} : vector<8x32xf32> to vector<8x8xf32>
    %54 = vector.extract_strided_slice %9 {offsets = [0, 16], sizes = [8, 8], strides = [1, 1]} : vector<8x32xf32> to vector<8x8xf32>
    %55 = vector.extract_strided_slice %10 {offsets = [0, 16], sizes = [8, 8], strides = [1, 1]} : vector<8x32xf32> to vector<8x8xf32>
    %cst_19 = arith.constant dense<0.000000e+00> : vector<8x8xf32>
    %56 = tpu.matmul %53, %54, %cst_19 {dimension_numbers = #tpu.dot_dimension_numbers<[1], [1], [0], [0], [0, 0, 1, 0], [], []>} : vector<8x8xf32>, vector<8x8xf32>, vector<8x8xf32> -> vector<8x8xf32>
    %cst_20 = arith.constant -1.000000e+30 : f32
    %57 = vector.broadcast %cst_20 : f32 to vector<8x8xf32>
    %58 = arith.select %5, %56, %57 : vector<8x8xi1>, vector<8x8xf32>
    %cst_21 = arith.constant dense<0xFF800000> : vector<8xf32>
    %59 = vector.multi_reduction <maximumf>, %58, %cst_21 [1] : vector<8x8xf32> to vector<8xf32>
    %60 = vector.shape_cast %59 : vector<8xf32> to vector<8x1xf32>
    %61 = vector.broadcast %60 : vector<8x1xf32> to vector<8x8xf32>
    %62 = arith.subf %58, %61 : vector<8x8xf32>
    %63 = math.exp %62 : vector<8x8xf32>
    %cst_22 = arith.constant dense<0.000000e+00> : vector<8xf32>
    %64 = vector.multi_reduction <add>, %63, %cst_22 [1] : vector<8x8xf32> to vector<8xf32>
    %65 = vector.shape_cast %64 : vector<8xf32> to vector<8x1xf32>
    %66 = tpu.reciprocal %65 {approx = true} : vector<8x1xf32> -> vector<8x1xf32>
    %67 = vector.broadcast %66 : vector<8x1xf32> to vector<8x8xf32>
    %68 = arith.mulf %63, %67 : vector<8x8xf32>
    %cst_23 = arith.constant dense<0.000000e+00> : vector<8x8xf32>
    %69 = tpu.matmul %68, %55, %cst_23 {dimension_numbers = #tpu.dot_dimension_numbers<[1], [0], [0], [1], [0, 0, 1, 1], [], []>} : vector<8x8xf32>, vector<8x8xf32>, vector<8x8xf32> -> vector<8x8xf32>
    %70 = vector.extract_strided_slice %6 {offsets = [16, 0], sizes = [8, 32], strides = [1, 1]} : vector<32x32xf32> to vector<8x32xf32>
    %cst_24 = arith.constant dense<0.000000e+00> : vector<8x32xf32>
    %71 = tpu.matmul %69, %70, %cst_24 {dimension_numbers = #tpu.dot_dimension_numbers<[1], [0], [0], [1], [0, 0, 1, 1], [], []>} : vector<8x8xf32>, vector<8x32xf32>, vector<8x32xf32> -> vector<8x32xf32>
    %72 = arith.addf %52, %71 : vector<8x32xf32>
    %73 = vector.extract_strided_slice %8 {offsets = [0, 24], sizes = [8, 8], strides = [1, 1]} : vector<8x32xf32> to vector<8x8xf32>
    %74 = vector.extract_strided_slice %9 {offsets = [0, 24], sizes = [8, 8], strides = [1, 1]} : vector<8x32xf32> to vector<8x8xf32>
    %75 = vector.extract_strided_slice %10 {offsets = [0, 24], sizes = [8, 8], strides = [1, 1]} : vector<8x32xf32> to vector<8x8xf32>
    %cst_25 = arith.constant dense<0.000000e+00> : vector<8x8xf32>
    %76 = tpu.matmul %73, %74, %cst_25 {dimension_numbers = #tpu.dot_dimension_numbers<[1], [1], [0], [0], [0, 0, 1, 0], [], []>} : vector<8x8xf32>, vector<8x8xf32>, vector<8x8xf32> -> vector<8x8xf32>
    %cst_26 = arith.constant -1.000000e+30 : f32
    %77 = vector.broadcast %cst_26 : f32 to vector<8x8xf32>
    %78 = arith.select %5, %76, %77 : vector<8x8xi1>, vector<8x8xf32>
    %cst_27 = arith.constant dense<0xFF800000> : vector<8xf32>
    %79 = vector.multi_reduction <maximumf>, %78, %cst_27 [1] : vector<8x8xf32> to vector<8xf32>
    %80 = vector.shape_cast %79 : vector<8xf32> to vector<8x1xf32>
    %81 = vector.broadcast %80 : vector<8x1xf32> to vector<8x8xf32>
    %82 = arith.subf %78, %81 : vector<8x8xf32>
    %83 = math.exp %82 : vector<8x8xf32>
    %cst_28 = arith.constant dense<0.000000e+00> : vector<8xf32>
    %84 = vector.multi_reduction <add>, %83, %cst_28 [1] : vector<8x8xf32> to vector<8xf32>
    %85 = vector.shape_cast %84 : vector<8xf32> to vector<8x1xf32>
    %86 = tpu.reciprocal %85 {approx = true} : vector<8x1xf32> -> vector<8x1xf32>
    %87 = vector.broadcast %86 : vector<8x1xf32> to vector<8x8xf32>
    %88 = arith.mulf %83, %87 : vector<8x8xf32>
    %cst_29 = arith.constant dense<0.000000e+00> : vector<8x8xf32>
    %89 = tpu.matmul %88, %75, %cst_29 {dimension_numbers = #tpu.dot_dimension_numbers<[1], [0], [0], [1], [0, 0, 1, 1], [], []>} : vector<8x8xf32>, vector<8x8xf32>, vector<8x8xf32> -> vector<8x8xf32>
    %90 = vector.extract_strided_slice %6 {offsets = [24, 0], sizes = [8, 32], strides = [1, 1]} : vector<32x32xf32> to vector<8x32xf32>
    %cst_30 = arith.constant dense<0.000000e+00> : vector<8x32xf32>
    %91 = tpu.matmul %89, %90, %cst_30 {dimension_numbers = #tpu.dot_dimension_numbers<[1], [0], [0], [1], [0, 0, 1, 1], [], []>} : vector<8x8xf32>, vector<8x32xf32>, vector<8x32xf32> -> vector<8x32xf32>
    %92 = arith.addf %72, %91 : vector<8x32xf32>
    %c0_31 = arith.constant 0 : index
    %c0_32 = arith.constant 0 : index
    %93 = vector.load %arg4[%c0_31, %c0_32] : memref<16x32xf32, #tpu.memory_space<vmem>>, vector<8x32xf32>
    tpu.vector_store %arg4[%c0_31, %c0_32], %92 {strides = array<i32>} : memref<16x32xf32, #tpu.memory_space<vmem>>, vector<8x32xf32>,
    %94 = vector.extract_strided_slice %2 {offsets = [8, 0], sizes = [8, 32], strides = [1, 1]} : vector<16x96xf32> to vector<8x32xf32>
    %95 = vector.extract_strided_slice %2 {offsets = [8, 32], sizes = [8, 32], strides = [1, 1]} : vector<16x96xf32> to vector<8x32xf32>
    %96 = vector.extract_strided_slice %2 {offsets = [8, 64], sizes = [8, 32], strides = [1, 1]} : vector<16x96xf32> to vector<8x32xf32>
    %97 = vector.shape_cast %7 : vector<1x32xf32> to vector<1x32xf32>
    %98 = vector.broadcast %97 : vector<1x32xf32> to vector<8x32xf32>
    %99 = vector.extract_strided_slice %94 {offsets = [0, 0], sizes = [8, 8], strides = [1, 1]} : vector<8x32xf32> to vector<8x8xf32>
    %100 = vector.extract_strided_slice %95 {offsets = [0, 0], sizes = [8, 8], strides = [1, 1]} : vector<8x32xf32> to vector<8x8xf32>
    %101 = vector.extract_strided_slice %96 {offsets = [0, 0], sizes = [8, 8], strides = [1, 1]} : vector<8x32xf32> to vector<8x8xf32>
    %cst_33 = arith.constant dense<0.000000e+00> : vector<8x8xf32>
    %102 = tpu.matmul %99, %100, %cst_33 {dimension_numbers = #tpu.dot_dimension_numbers<[1], [1], [0], [0], [0, 0, 1, 0], [], []>} : vector<8x8xf32>, vector<8x8xf32>, vector<8x8xf32> -> vector<8x8xf32>
    %cst_34 = arith.constant -1.000000e+30 : f32
    %103 = vector.broadcast %cst_34 : f32 to vector<8x8xf32>
    %104 = arith.select %5, %102, %103 : vector<8x8xi1>, vector<8x8xf32>
    %cst_35 = arith.constant dense<0xFF800000> : vector<8xf32>
    %105 = vector.multi_reduction <maximumf>, %104, %cst_35 [1] : vector<8x8xf32> to vector<8xf32>
    %106 = vector.shape_cast %105 : vector<8xf32> to vector<8x1xf32>
    %107 = vector.broadcast %106 : vector<8x1xf32> to vector<8x8xf32>
    %108 = arith.subf %104, %107 : vector<8x8xf32>
    %109 = math.exp %108 : vector<8x8xf32>
    %cst_36 = arith.constant dense<0.000000e+00> : vector<8xf32>
    %110 = vector.multi_reduction <add>, %109, %cst_36 [1] : vector<8x8xf32> to vector<8xf32>
    %111 = vector.shape_cast %110 : vector<8xf32> to vector<8x1xf32>
    %112 = tpu.reciprocal %111 {approx = true} : vector<8x1xf32> -> vector<8x1xf32>
    %113 = vector.broadcast %112 : vector<8x1xf32> to vector<8x8xf32>
    %114 = arith.mulf %109, %113 : vector<8x8xf32>
    %cst_37 = arith.constant dense<0.000000e+00> : vector<8x8xf32>
    %115 = tpu.matmul %114, %101, %cst_37 {dimension_numbers = #tpu.dot_dimension_numbers<[1], [0], [0], [1], [0, 0, 1, 1], [], []>} : vector<8x8xf32>, vector<8x8xf32>, vector<8x8xf32> -> vector<8x8xf32>
    %116 = vector.extract_strided_slice %6 {offsets = [0, 0], sizes = [8, 32], strides = [1, 1]} : vector<32x32xf32> to vector<8x32xf32>
    %cst_38 = arith.constant dense<0.000000e+00> : vector<8x32xf32>
    %117 = tpu.matmul %115, %116, %cst_38 {dimension_numbers = #tpu.dot_dimension_numbers<[1], [0], [0], [1], [0, 0, 1, 1], [], []>} : vector<8x8xf32>, vector<8x32xf32>, vector<8x32xf32> -> vector<8x32xf32>
    %118 = arith.addf %98, %117 : vector<8x32xf32>
    %119 = vector.extract_strided_slice %94 {offsets = [0, 8], sizes = [8, 8], strides = [1, 1]} : vector<8x32xf32> to vector<8x8xf32>
    %120 = vector.extract_strided_slice %95 {offsets = [0, 8], sizes = [8, 8], strides = [1, 1]} : vector<8x32xf32> to vector<8x8xf32>
    %121 = vector.extract_strided_slice %96 {offsets = [0, 8], sizes = [8, 8], strides = [1, 1]} : vector<8x32xf32> to vector<8x8xf32>
    %cst_39 = arith.constant dense<0.000000e+00> : vector<8x8xf32>
    %122 = tpu.matmul %119, %120, %cst_39 {dimension_numbers = #tpu.dot_dimension_numbers<[1], [1], [0], [0], [0, 0, 1, 0], [], []>} : vector<8x8xf32>, vector<8x8xf32>, vector<8x8xf32> -> vector<8x8xf32>
    %cst_40 = arith.constant -1.000000e+30 : f32
    %123 = vector.broadcast %cst_40 : f32 to vector<8x8xf32>
    %124 = arith.select %5, %122, %123 : vector<8x8xi1>, vector<8x8xf32>
    %cst_41 = arith.constant dense<0xFF800000> : vector<8xf32>
    %125 = vector.multi_reduction <maximumf>, %124, %cst_41 [1] : vector<8x8xf32> to vector<8xf32>
    %126 = vector.shape_cast %125 : vector<8xf32> to vector<8x1xf32>
    %127 = vector.broadcast %126 : vector<8x1xf32> to vector<8x8xf32>
    %128 = arith.subf %124, %127 : vector<8x8xf32>
    %129 = math.exp %128 : vector<8x8xf32>
    %cst_42 = arith.constant dense<0.000000e+00> : vector<8xf32>
    %130 = vector.multi_reduction <add>, %129, %cst_42 [1] : vector<8x8xf32> to vector<8xf32>
    %131 = vector.shape_cast %130 : vector<8xf32> to vector<8x1xf32>
    %132 = tpu.reciprocal %131 {approx = true} : vector<8x1xf32> -> vector<8x1xf32>
    %133 = vector.broadcast %132 : vector<8x1xf32> to vector<8x8xf32>
    %134 = arith.mulf %129, %133 : vector<8x8xf32>
    %cst_43 = arith.constant dense<0.000000e+00> : vector<8x8xf32>
    %135 = tpu.matmul %134, %121, %cst_43 {dimension_numbers = #tpu.dot_dimension_numbers<[1], [0], [0], [1], [0, 0, 1, 1], [], []>} : vector<8x8xf32>, vector<8x8xf32>, vector<8x8xf32> -> vector<8x8xf32>
    %136 = vector.extract_strided_slice %6 {offsets = [8, 0], sizes = [8, 32], strides = [1, 1]} : vector<32x32xf32> to vector<8x32xf32>
    %cst_44 = arith.constant dense<0.000000e+00> : vector<8x32xf32>
    %137 = tpu.matmul %135, %136, %cst_44 {dimension_numbers = #tpu.dot_dimension_numbers<[1], [0], [0], [1], [0, 0, 1, 1], [], []>} : vector<8x8xf32>, vector<8x32xf32>, vector<8x32xf32> -> vector<8x32xf32>
    %138 = arith.addf %118, %137 : vector<8x32xf32>
    %139 = vector.extract_strided_slice %94 {offsets = [0, 16], sizes = [8, 8], strides = [1, 1]} : vector<8x32xf32> to vector<8x8xf32>
    %140 = vector.extract_strided_slice %95 {offsets = [0, 16], sizes = [8, 8], strides = [1, 1]} : vector<8x32xf32> to vector<8x8xf32>
    %141 = vector.extract_strided_slice %96 {offsets = [0, 16], sizes = [8, 8], strides = [1, 1]} : vector<8x32xf32> to vector<8x8xf32>
    %cst_45 = arith.constant dense<0.000000e+00> : vector<8x8xf32>
    %142 = tpu.matmul %139, %140, %cst_45 {dimension_numbers = #tpu.dot_dimension_numbers<[1], [1], [0], [0], [0, 0, 1, 0], [], []>} : vector<8x8xf32>, vector<8x8xf32>, vector<8x8xf32> -> vector<8x8xf32>
    %cst_46 = arith.constant -1.000000e+30 : f32
    %143 = vector.broadcast %cst_46 : f32 to vector<8x8xf32>
    %144 = arith.select %5, %142, %143 : vector<8x8xi1>, vector<8x8xf32>
    %cst_47 = arith.constant dense<0xFF800000> : vector<8xf32>
    %145 = vector.multi_reduction <maximumf>, %144, %cst_47 [1] : vector<8x8xf32> to vector<8xf32>
    %146 = vector.shape_cast %145 : vector<8xf32> to vector<8x1xf32>
    %147 = vector.broadcast %146 : vector<8x1xf32> to vector<8x8xf32>
    %148 = arith.subf %144, %147 : vector<8x8xf32>
    %149 = math.exp %148 : vector<8x8xf32>
    %cst_48 = arith.constant dense<0.000000e+00> : vector<8xf32>
    %150 = vector.multi_reduction <add>, %149, %cst_48 [1] : vector<8x8xf32> to vector<8xf32>
    %151 = vector.shape_cast %150 : vector<8xf32> to vector<8x1xf32>
    %152 = tpu.reciprocal %151 {approx = true} : vector<8x1xf32> -> vector<8x1xf32>
    %153 = vector.broadcast %152 : vector<8x1xf32> to vector<8x8xf32>
    %154 = arith.mulf %149, %153 : vector<8x8xf32>
    %cst_49 = arith.constant dense<0.000000e+00> : vector<8x8xf32>
    %155 = tpu.matmul %154, %141, %cst_49 {dimension_numbers = #tpu.dot_dimension_numbers<[1], [0], [0], [1], [0, 0, 1, 1], [], []>} : vector<8x8xf32>, vector<8x8xf32>, vector<8x8xf32> -> vector<8x8xf32>
    %156 = vector.extract_strided_slice %6 {offsets = [16, 0], sizes = [8, 32], strides = [1, 1]} : vector<32x32xf32> to vector<8x32xf32>
    %cst_50 = arith.constant dense<0.000000e+00> : vector<8x32xf32>
    %157 = tpu.matmul %155, %156, %cst_50 {dimension_numbers = #tpu.dot_dimension_numbers<[1], [0], [0], [1], [0, 0, 1, 1], [], []>} : vector<8x8xf32>, vector<8x32xf32>, vector<8x32xf32> -> vector<8x32xf32>
    %158 = arith.addf %138, %157 : vector<8x32xf32>
    %159 = vector.extract_strided_slice %94 {offsets = [0, 24], sizes = [8, 8], strides = [1, 1]} : vector<8x32xf32> to vector<8x8xf32>
    %160 = vector.extract_strided_slice %95 {offsets = [0, 24], sizes = [8, 8], strides = [1, 1]} : vector<8x32xf32> to vector<8x8xf32>
    %161 = vector.extract_strided_slice %96 {offsets = [0, 24], sizes = [8, 8], strides = [1, 1]} : vector<8x32xf32> to vector<8x8xf32>
    %cst_51 = arith.constant dense<0.000000e+00> : vector<8x8xf32>
    %162 = tpu.matmul %159, %160, %cst_51 {dimension_numbers = #tpu.dot_dimension_numbers<[1], [1], [0], [0], [0, 0, 1, 0], [], []>} : vector<8x8xf32>, vector<8x8xf32>, vector<8x8xf32> -> vector<8x8xf32>
    %cst_52 = arith.constant -1.000000e+30 : f32
    %163 = vector.broadcast %cst_52 : f32 to vector<8x8xf32>
    %164 = arith.select %5, %162, %163 : vector<8x8xi1>, vector<8x8xf32>
    %cst_53 = arith.constant dense<0xFF800000> : vector<8xf32>
    %165 = vector.multi_reduction <maximumf>, %164, %cst_53 [1] : vector<8x8xf32> to vector<8xf32>
    %166 = vector.shape_cast %165 : vector<8xf32> to vector<8x1xf32>
    %167 = vector.broadcast %166 : vector<8x1xf32> to vector<8x8xf32>
    %168 = arith.subf %164, %167 : vector<8x8xf32>
    %169 = math.exp %168 : vector<8x8xf32>
    %cst_54 = arith.constant dense<0.000000e+00> : vector<8xf32>
    %170 = vector.multi_reduction <add>, %169, %cst_54 [1] : vector<8x8xf32> to vector<8xf32>
    %171 = vector.shape_cast %170 : vector<8xf32> to vector<8x1xf32>
    %172 = tpu.reciprocal %171 {approx = true} : vector<8x1xf32> -> vector<8x1xf32>
    %173 = vector.broadcast %172 : vector<8x1xf32> to vector<8x8xf32>
    %174 = arith.mulf %169, %173 : vector<8x8xf32>
    %cst_55 = arith.constant dense<0.000000e+00> : vector<8x8xf32>
    %175 = tpu.matmul %174, %161, %cst_55 {dimension_numbers = #tpu.dot_dimension_numbers<[1], [0], [0], [1], [0, 0, 1, 1], [], []>} : vector<8x8xf32>, vector<8x8xf32>, vector<8x8xf32> -> vector<8x8xf32>
    %176 = vector.extract_strided_slice %6 {offsets = [24, 0], sizes = [8, 32], strides = [1, 1]} : vector<32x32xf32> to vector<8x32xf32>
    %cst_56 = arith.constant dense<0.000000e+00> : vector<8x32xf32>
    %177 = tpu.matmul %175, %176, %cst_56 {dimension_numbers = #tpu.dot_dimension_numbers<[1], [0], [0], [1], [0, 0, 1, 1], [], []>} : vector<8x8xf32>, vector<8x32xf32>, vector<8x32xf32> -> vector<8x32xf32>
    %178 = arith.addf %158, %177 : vector<8x32xf32>
    %c8 = arith.constant 8 : index
    %c0_57 = arith.constant 0 : index
    %179 = vector.load %arg4[%c8, %c0_57] : memref<16x32xf32, #tpu.memory_space<vmem>>, vector<8x32xf32>
    tpu.vector_store %arg4[%c8, %c0_57], %178 {strides = array<i32>} : memref<16x32xf32, #tpu.memory_space<vmem>>, vector<8x32xf32>,
    return
  }
}

</mosaic_0001>

<bundles_post_ra>
// kernel: tpu_custom_call.1
= control target key start
LH: loop header
LB: loop body
LE: loop exit
PB: predicated region body
PF: predicated region fallthrough
CT: control target
= control target key end

     0   :  { %9 = vsyncpa [#allocation3], 0  ;;  %s1252_s0 = inlined_call_operand.hbm [shape: f32[16,32], index: 0, kind: input, shape index: {}]   ;;  %s1253_s1 = inlined_call_operand.hbm [shape: f32[32,96], index: 1, kind: input, shape index: {}]   ;;  %s1254_s2 = inlined_call_operand.hbm [shape: f32[32,32], index: 2, kind: input, shape index: {}]   ;;  %s1255_s3 = inlined_call_operand.vmem [shape: f32[1,32], index: 3, kind: input, shape index: {}]   ;;  %s1256_s4 = inlined_call_operand.hbm [shape: f32[16,32], index: 4, kind: output, shape index: {}]  }
   0x1   :  { %10 = vsyncpa [#allocation6], 0 }
   0x2   :  { %11 = vsyncpa [#allocation4], 0  ;;  %s29_s17 = sshll.u32 %s1253_s1, 4  ;;  %s1041_s18 = smov [#allocation5]   ;;  %s30_s17 = int_to_ptr.hbm [resolvable:$true] %s29_s17 }
   0x3   :  { %s31_s19 = sshll.u32 %s1041_s18, 4  ;;  %s16_s22 = sshll.u32 %s1252_s0, 4  ;;  %s32_s19 = int_to_ptr.vmem [resolvable:$true] %s31_s19  ;;  %s17_s22 = int_to_ptr.hbm [resolvable:$true] %s16_s22 }
   0x4   :  { %s1042_s23 = smov 128   ;;  %s1043_s24 = smov 8  }
   0x5   :  { %37 = dma.hbm_to_vmem [thread:$0]  %s30_s17, 512, %s32_s19, [#allocation6], %s1042_s23, %s1042_s23, %s1043_s24  }
   0x6   :  { %s1044_s25 = smov [#allocation2]   ;;  %s42_s1 = sshll.u32 %s1254_s2, 4  ;;  %s43_s1 = int_to_ptr.hbm [resolvable:$true] %s42_s1 }
   0x7   :  { %s18_s26 = sshll.u32 %s1044_s25, 4  ;;  %s1045_s0 = smov [#allocation7]   ;;  %s19_s26 = int_to_ptr.vmem [resolvable:$true] %s18_s26 }
   0x8   :  { %24 = dma.hbm_to_vmem [thread:$0]  %s17_s22, 256, %s19_s26, [#allocation3], %s1042_s23, %s1042_s23, %s1043_s24  }
   0x9   :  { %s44_s29 = sshll.u32 %s1045_s0, 4  ;;  %s45_s29 = int_to_ptr.vmem [resolvable:$true] %s44_s29 }
   0xa   :  { %50 = dma.hbm_to_vmem [thread:$0]  %s43_s1, 512, %s45_s29, [#allocation6], %s1042_s23, %s1042_s23, %s1043_s24  }
   0xb   :  { %1035 = dma.done.wait [#allocation3], 256  }
   0xc   :  { %1036 = vsyncadd [#allocation3], 4294967040 }
   0xd   :  { %1037 = dma.done.wait [#allocation6], 1024  }
   0xe   :  { %1038 = vsyncadd [#allocation6], 4294966272  ;;  %v70_v0 = vld [vmem:[#allocation5 + $0x18] sm:$0xff]  ;;  %v69_v1 = vld [vmem:[#allocation5 + $0x10] sm:$0xff]  ;;  %vm71_vm0 = vcmask 261120   ;;  %s1046_s2 = smov 88   ;;  %v101_v12 = vlaneseq }
   0xf   :  { %90 = vmatpush.msra.mxu0 %v70_v0  ;;  %v68_v2 = vld [vmem:[#allocation5 + $0x8] sm:$0xff]  ;;  %v67_v3 = vld [vmem:[#allocation5] sm:$0xff]  ;;  %v65_v4 = vld [vmem:[#allocation2] sm:$0xff]  ;;  %s1047_s30 = smov 64   ;;  %s1048_s5 = smov 96   ;;  %vm117_vm1 = vcmask 64512  }
  0x10   :  { %s1049_s6 = smov 120   ;;  %s1050_s7 = smov 80   ;;  %v102_v13 = vshrl.u32 %v101_v12, 7  ;;  %v104_v14 = vand.u32 127, %v101_v12  ;;  %v66_v24 = vld [vmem:[#allocation2 + $0x8] sm:$0xff]  ;;  %v1139_v30 = vld [vmem:[#allocation7] sm:$0xff] }
  0x11   :  { %91 = vmatpush.msra.mxu0 %v69_v1  ;;  %s1051_s8 = smov 72   ;;  %s1052_s9 = smov 112   ;;  %198 = vmatpush.msra.mxu3 %v1139_v30  ;;  %v1170_v63 = vld [vmem:[#allocation7 + $0x8] sm:$0xff]  ;;  %v1173_v0 = vld [vmem:[#allocation7 + $0x10] sm:$0xff]  ;;  %v1176_v1 = vld [vmem:[#allocation7 + $0x18] sm:$0xff] }
  0x12   :  { %vm1123_vm2 = vcmp.ge.s32.totalorder %v102_v13, %v104_v14  ;;  %s1053_s10 = smov 104   ;;  %s1054_s11 = smov 56  }
  0x13   :  { %92 = vmatpush.msra.mxu0 %v68_v2  ;;  %s1055_s12 = smov 48   ;;  %s1056_s13 = smov 40  }
  0x14   :  { %s841_s19 = sshll.u32 %s1256_s4, 4  ;;  %s842_s19 = int_to_ptr.hbm [resolvable:$true] %s841_s19 }
  0x15   :  { %93 = vmatpush.msra.mxu0 %v67_v3 }
  0x16   :  { %855 = vmatmul.msk.f32.vlgmr.msra.gmra.mxu0 %vm71_vm0, %v65_v4 }
  0x1e   :  { %856 = vmatmul.msk.f32.gmra.mxu0 %vm71_vm0, %v66_v24 }
  0x93   :  { %v1102_v5 = vpop.f32.mrf.mxu0 }
  0x94   :  { %206 = vrot.lane.b32.xlu2 %v1102_v5, %s1046_s2  ;;  %154 = vrot.lane.b32.xlu1 %v1102_v5, %s1047_s30 }
  0x95   :  { %115 = vrot.lane.b32.xlu0 %v1102_v5, %s1048_s5 }
  0x9b   :  { %v1142_v31 = vpop.f32.mrf.mxu0 }
  0x9c   :  { %204 = vrot.lane.b32.xlu2 %v1102_v5, %s1049_s6 }
  0xa4   :  { %296 = vrot.lane.b32.xlu2 %v1102_v5, %s1050_s7 }
  0xac   :  { %386 = vrot.lane.b32.xlu2 %v1102_v5, %s1051_s8 }
  0xb4   :  { %294 = vrot.lane.b32.xlu2 %v1102_v5, %s1052_s9 }
  0xee   :  { %v207_v6 = vpop.permute.xlu2 %206 }
  0xf6   :  { %v205_v7 = vpop.permute.xlu2 %204 }
  0xfe   :  { %v297_v8 = vpop.permute.xlu2 %296 }
 0x106   :  { %v387_v9 = vpop.permute.xlu2 %386  ;;  %v155_v10 = vpop.permute.xlu1 %154 }
 0x107   :  { %v116_v11 = vpop.permute.xlu0 %115  ;;  %175 = vmatpush.msra.mxu2 %v155_v10  ;;  %869 = vmatpush.xpose.msk.msrb.mxu0 %vm117_vm1, %v387_v9 }
 0x108   :  { %857 = vmatpush.xpose.msk.msra.mxu1 %vm117_vm1, %v116_v11 }
 0x109   :  { %861 = vmatpush.xpose.msk.msrb.mxu2 %vm117_vm1, %v207_v6 }
 0x10b   :  { %858 = vmatmul.msk.f32.vlgmr.msra.gmra.mxu1 %vm117_vm1, %v1102_v5 }
 0x10c   :  { %288 = vmatpush.msrb.mxu1 %v1170_v63 }
 0x10e   :  { %v295_v29 = vpop.permute.xlu2 %294  ;;  %378 = vmatpush.msra.mxu1 %v1173_v0 }
 0x188   :  { %v139_v16 = vpop.f32.mrf.mxu1 }
 0x189   :  { %v142_v17 = vsel %vm1123_vm2, %v139_v16, -1e+30 }
 0x18a   :  { %v143_v18 = vsel %vm117_vm1, %v142_v17, -inf }
 0x18b   :  { %144 = vmax.xlane.f32.xlu0 %v143_v18  ;;  %v1193_v18 = vld [vmem:[%s1255_s3] ss:$0 sm:$0xff]  ;;  %s1057_s3 = smov [#allocation8]  }
 0x18c   :  { %s839_s16 = sshll.u32 %s1057_s3, 4  ;;  %s840_s16 = int_to_ptr.vmem [resolvable:$true] %s839_s16 }
 0x1fe   :  { %v145_v19 = vpop.xlane.xlu0 %144 }
 0x1ff   :  { %v146_v20 = vsub.f32 %v142_v17, %v145_v19 }
 0x201   :  { %v147_v21 = vmul.f32 1.442695, %v146_v20 }
 0x203   :  { %907 = vpow2.f32 %v147_v21 }
 0x209   :  { %v908_v22 = vpop.eup %907 }
 0x20a   :  { %v149_v23 = vsel %vm117_vm1, %v908_v22, 0.0 }
 0x20b   :  { %150 = vadd.xlane.f32.xlu1 %v149_v23 }
 0x224   :  { %384 = vrot.lane.b32.xlu1 %v1102_v5, %s1053_s10 }
 0x27e   :  { %v151_v25 = vpop.xlane.xlu1 %150 }
 0x27f   :  { %909 = vrcp.f32 %v151_v25 }
 0x285   :  { %v910_v26 = vpop.eup %909 }
 0x286   :  { %v153_v27 = vmul.f32 %v910_v26, %v908_v22 }
 0x288   :  { %859 = vmatmul.msk.f32.vlgmr.msra.gmra.mxu2 %vm117_vm1, %v153_v27 }
 0x289   :  { %865 = vmatpush.xpose.msk.msra.mxu2 %vm117_vm1, %v297_v8 }
 0x290   :  { %862 = vmatmul.msk.f32.vlgmr.msrb.gmra.mxu2 %vm117_vm1, %v205_v7 }
 0x296   :  { %v385_v28 = vpop.permute.xlu1 %384 }
 0x297   :  { %870 = vmatmul.msk.f32.vlgmr.msrb.gmra.mxu0 %vm117_vm1, %v385_v28 }
 0x298   :  { %866 = vmatmul.msk.f32.vlgmr.msra.gmra.mxu2 %vm117_vm1, %v295_v29 }
 0x30b   :  { %v177_v32 = vpop.f32.mrf.mxu2 }
 0x30c   :  { %860 = vmatmul.msk.f32.vlgmr.msra.gmra.mxu3 %vm117_vm1, %v177_v32 }
 0x313   :  { %v229_v33 = vpop.f32.mrf.mxu2 }
 0x314   :  { %v232_v34 = vsel %vm1123_vm2, %v229_v33, -1e+30  ;;  %v409_v35 = vpop.f32.mrf.mxu0 }
 0x315   :  { %v412_v36 = vsel %vm1123_vm2, %v409_v35, -1e+30  ;;  %v233_v37 = vsel %vm117_vm1, %v232_v34, -inf }
 0x316   :  { %234 = vmax.xlane.f32.xlu2 %v233_v37  ;;  %v413_v38 = vsel %vm117_vm1, %v412_v36, -inf }
 0x317   :  { %414 = vmax.xlane.f32.xlu1 %v413_v38 }
 0x31b   :  { %v319_v47 = vpop.f32.mrf.mxu2 }
 0x31c   :  { %v322_v49 = vsel %vm1123_vm2, %v319_v47, -1e+30 }
 0x31d   :  { %v323_v50 = vsel %vm117_vm1, %v322_v49, -inf }
 0x32e   :  { %244 = vrot.lane.b32.xlu2 %v1102_v5, %s1054_s11 }
 0x330   :  { %334 = vrot.lane.b32.xlu1 %v1102_v5, %s1055_s12 }
 0x336   :  { %564 = vrot.lane.b32.xlu2 %v1142_v31, %s1049_s6 }
 0x338   :  { %476 = vrot.lane.b32.xlu1 %v1142_v31, %s1048_s5 }
 0x389   :  { %v235_v39 = vpop.xlane.xlu2 %234 }
 0x38a   :  { %v415_v40 = vpop.xlane.xlu1 %414  ;;  %v236_v45 = vsub.f32 %v232_v34, %v235_v39 }
 0x38b   :  { %v416_v41 = vsub.f32 %v412_v36, %v415_v40 }
 0x38c   :  { %v237_v48 = vmul.f32 1.442695, %v236_v45 }
 0x38d   :  { %v417_v42 = vmul.f32 1.442695, %v416_v41 }
 0x38f   :  { %911 = vpow2.f32 %v417_v42 }
 0x390   :  { %913 = vpow2.f32 %v237_v48 }
 0x391   :  { %v245_v43 = vpop.permute.xlu2 %244 }
 0x392   :  { %265 = vmatpush.msrb.mxu3 %v245_v43 }
 0x395   :  { %v912_v44 = vpop.eup %911 }
 0x396   :  { %v419_v46 = vsel %vm117_vm1, %v912_v44, 0.0  ;;  %v914_v52 = vpop.eup %913 }
 0x397   :  { %420 = vadd.xlane.f32.xlu0 %v419_v46  ;;  %v239_v53 = vsel %vm117_vm1, %v914_v52, 0.0 }
 0x399   :  { %v565_v14 = vpop.permute.xlu2 %564 }
 0x39f   :  { %324 = vmax.xlane.f32.xlu0 %v323_v50 }
 0x3a2   :  { %v335_v51 = vpop.permute.xlu1 %334 }
 0x3a3   :  { %355 = vmatpush.msra.mxu3 %v335_v51 }
 0x3a7   :  { %240 = vadd.xlane.f32.xlu0 %v239_v53 }
 0x3aa   :  { %v477_v10 = vpop.permute.xlu1 %476 }
 0x40a   :  { %v421_v54 = vpop.xlane.xlu0 %420 }
 0x412   :  { %v325_v55 = vpop.xlane.xlu0 %324 }
 0x413   :  { %v326_v56 = vsub.f32 %v322_v49, %v325_v55 }
 0x415   :  { %v327_v57 = vmul.f32 1.442695, %v326_v56 }
 0x417   :  { %915 = vpow2.f32 %v327_v57 }
 0x41a   :  { %v241_v58 = vpop.xlane.xlu0 %240 }
 0x41b   :  { %917 = vrcp.f32 %v241_v58 }
 0x41d   :  { %v916_v59 = vpop.eup %915 }
 0x41e   :  { %v329_v60 = vsel %vm117_vm1, %v916_v59, 0.0 }
 0x41f   :  { %330 = vadd.xlane.f32.xlu0 %v329_v60 }
 0x421   :  { %v918_v61 = vpop.eup %917 }
 0x422   :  { %v243_v62 = vmul.f32 %v918_v61, %v914_v52 }
 0x424   :  { %863 = vmatmul.msk.f32.vlgmr.msrb.gmra.mxu3 %vm117_vm1, %v243_v62 }
 0x425   :  { %468 = vmatpush.msrb.mxu3 %v1176_v1 }
 0x433   :  { %424 = vrot.lane.b32.xlu0 %v1102_v5, %s1056_s13  ;;  %v200_v5 = vpop.f32.mrf.mxu3 }
 0x434   :  { %v203_v22 = vadd.f32 %v1193_v18, %v200_v5 }
 0x43b   :  { %566 = vrot.lane.b32.xlu0 %v1142_v31, %s1046_s2 }
 0x492   :  { %v331_v2 = vpop.xlane.xlu0 %330 }
 0x493   :  { %919 = vrcp.f32 %v331_v2 }
 0x494   :  { %921 = vrcp.f32 %v421_v54 }
 0x499   :  { %v920_v3 = vpop.eup %919 }
 0x49a   :  { %v333_v4 = vmul.f32 %v920_v3, %v916_v59  ;;  %v922_v6 = vpop.eup %921 }
 0x49b   :  { %v423_v7 = vmul.f32 %v922_v6, %v912_v44 }
 0x49c   :  { %867 = vmatmul.msk.f32.vlgmr.msra.gmra.mxu3 %vm117_vm1, %v333_v4 }
 0x4a5   :  { %v425_v8 = vpop.permute.xlu0 %424 }
 0x4a6   :  { %445 = vmatpush.msrb.mxu2 %v425_v8 }
 0x4a7   :  { %v267_v9 = vpop.f32.mrf.mxu3  ;;  %871 = vmatmul.msk.f32.vlgmr.msrb.gmra.mxu2 %vm117_vm1, %v423_v7 }
 0x4a8   :  { %864 = vmatmul.msk.f32.vlgmr.msrb.gmra.mxu1 %vm117_vm1, %v267_v9  ;;  %558 = vmatpush.msra.mxu2 %v1139_v30 }
 0x4a9   :  { %873 = vmatpush.xpose.msk.msrb.mxu1 %vm117_vm1, %v477_v10 }
 0x4ad   :  { %v567_v11 = vpop.permute.xlu0 %566 }
 0x4ae   :  { %877 = vmatpush.xpose.msk.msra.mxu3 %vm117_vm1, %v567_v11 }
 0x51f   :  { %v357_v12 = vpop.f32.mrf.mxu3 }
 0x520   :  { %868 = vmatmul.msk.f32.vlgmr.msra.gmra.mxu1 %vm117_vm1, %v357_v12 }
 0x525   :  { %v290_v16 = vpop.f32.mrf.mxu1 }
 0x526   :  { %v293_v23 = vadd.f32 %v290_v16, %v203_v22 }
 0x528   :  { %874 = vmatmul.msk.f32.vlgmr.msrb.gmra.mxu1 %vm117_vm1, %v1142_v31 }
 0x52a   :  { %v447_v13 = vpop.f32.mrf.mxu2 }
 0x52b   :  { %872 = vmatmul.msk.f32.vlgmr.msrb.gmra.mxu3 %vm117_vm1, %v447_v13 }
 0x533   :  { %878 = vmatmul.msk.f32.vlgmr.msra.gmra.mxu3 %vm117_vm1, %v565_v14 }
 0x59d   :  { %v380_v17 = vpop.f32.mrf.mxu1 }
 0x59e   :  { %v383_v24 = vadd.f32 %v380_v17, %v293_v23 }
 0x5a5   :  { %v499_v19 = vpop.f32.mrf.mxu1 }
 0x5a6   :  { %v502_v20 = vsel %vm1123_vm2, %v499_v19, -1e+30 }
 0x5a7   :  { %v503_v21 = vsel %vm117_vm1, %v502_v20, -inf }
 0x5a8   :  { %504 = vmax.xlane.f32.xlu0 %v503_v21 }
 0x5ae   :  { %v470_v25 = vpop.f32.mrf.mxu3 }
 0x5af   :  { %v473_v26 = vadd.f32 %v470_v25, %v383_v24 }
 0x5b1   :  { %474 = vst.msk [vmem:[#allocation8] sm:$0xff] %vm71_vm0, %v473_v26 }
 0x5b6   :  { %v589_v27 = vpop.f32.mrf.mxu3 }
 0x5b7   :  { %v592_v28 = vsel %vm1123_vm2, %v589_v27, -1e+30 }
 0x5b8   :  { %v593_v29 = vsel %vm117_vm1, %v592_v28, -inf }
 0x5b9   :  { %594 = vmax.xlane.f32.xlu2 %v593_v29 }
 0x5d1   :  { %514 = vrot.lane.b32.xlu2 %v1142_v31, %s1047_s30 }
 0x5d9   :  { %746 = vrot.lane.b32.xlu2 %v1142_v31, %s1051_s8 }
 0x61b   :  { %v505_v30 = vpop.xlane.xlu0 %504 }
 0x61c   :  { %v506_v32 = vsub.f32 %v502_v20, %v505_v30 }
 0x61e   :  { %v507_v33 = vmul.f32 1.442695, %v506_v32 }
 0x620   :  { %923 = vpow2.f32 %v507_v33 }
 0x626   :  { %v924_v34 = vpop.eup %923 }
 0x627   :  { %v509_v35 = vsel %vm117_vm1, %v924_v34, 0.0 }
 0x628   :  { %510 = vadd.xlane.f32.xlu1 %v509_v35 }
 0x62c   :  { %v595_v36 = vpop.xlane.xlu2 %594 }
 0x62d   :  { %v596_v37 = vsub.f32 %v592_v28, %v595_v36 }
 0x62f   :  { %v597_v38 = vmul.f32 1.442695, %v596_v37 }
 0x631   :  { %925 = vpow2.f32 %v597_v38 }
 0x634   :  { %v515_v39 = vpop.permute.xlu2 %514 }
 0x635   :  { %535 = vmatpush.msra.mxu0 %v515_v39 }
 0x637   :  { %648 = vmatpush.msrb.mxu0 %v1170_v63  ;;  %v926_v40 = vpop.eup %925 }
 0x638   :  { %v599_v41 = vsel %vm117_vm1, %v926_v40, 0.0 }
 0x639   :  { %600 = vadd.xlane.f32.xlu0 %v599_v41 }
 0x63c   :  { %v747_v45 = vpop.permute.xlu2 %746 }
 0x641   :  { %604 = vrot.lane.b32.xlu1 %v1142_v31, %s1054_s11 }
 0x649   :  { %744 = vrot.lane.b32.xlu1 %v1142_v31, %s1053_s10 }
 0x64d   :  { %656 = vrot.lane.b32.xlu0 %v1142_v31, %s1050_s7 }
 0x655   :  { %654 = vrot.lane.b32.xlu0 %v1142_v31, %s1052_s9 }
 0x69b   :  { %v511_v42 = vpop.xlane.xlu1 %510 }
 0x69c   :  { %927 = vrcp.f32 %v511_v42 }
 0x6a2   :  { %v928_v43 = vpop.eup %927 }
 0x6a3   :  { %v513_v44 = vmul.f32 %v928_v43, %v924_v34 }
 0x6a5   :  { %875 = vmatmul.msk.f32.vlgmr.msra.gmra.mxu0 %vm117_vm1, %v513_v44 }
 0x6a6   :  { %885 = vmatpush.xpose.msk.msra.mxu0 %vm117_vm1, %v747_v45 }
 0x6ac   :  { %v601_v46 = vpop.xlane.xlu0 %600 }
 0x6ad   :  { %929 = vrcp.f32 %v601_v46 }
 0x6b3   :  { %v930_v47 = vpop.eup %929  ;;  %v605_v48 = vpop.permute.xlu1 %604 }
 0x6b4   :  { %v603_v49 = vmul.f32 %v930_v47, %v926_v40  ;;  %625 = vmatpush.msra.mxu1 %v605_v48 }
 0x6b6   :  { %738 = vmatpush.msrb.mxu1 %v1173_v0 }
 0x6b7   :  { %879 = vmatmul.msk.f32.vlgmr.msra.gmra.mxu1 %vm117_vm1, %v603_v49 }
 0x6bb   :  { %v745_v54 = vpop.permute.xlu1 %744 }
 0x6bf   :  { %v657_v50 = vpop.permute.xlu0 %656 }
 0x6c0   :  { %881 = vmatpush.xpose.msk.msrb.mxu2 %vm117_vm1, %v657_v50 }
 0x6c7   :  { %v655_v52 = vpop.permute.xlu0 %654 }
 0x722   :  { %v537_v51 = vpop.f32.mrf.mxu0 }
 0x723   :  { %876 = vmatmul.msk.f32.vlgmr.msra.gmra.mxu2 %vm117_vm1, %v537_v51 }
 0x72b   :  { %882 = vmatmul.msk.f32.vlgmr.msrb.gmra.mxu2 %vm117_vm1, %v655_v52 }
 0x734   :  { %v627_v53 = vpop.f32.mrf.mxu1 }
 0x735   :  { %880 = vmatmul.msk.f32.vlgmr.msrb.gmra.mxu0 %vm117_vm1, %v627_v53 }
 0x73d   :  { %886 = vmatmul.msk.f32.vlgmr.msra.gmra.mxu0 %vm117_vm1, %v745_v54 }
 0x7a6   :  { %v560_v55 = vpop.f32.mrf.mxu2 }
 0x7a7   :  { %v563_v58 = vadd.f32 %v1193_v18, %v560_v55 }
 0x7ae   :  { %v679_v56 = vpop.f32.mrf.mxu2 }
 0x7af   :  { %v682_v57 = vsel %vm1123_vm2, %v679_v56, -1e+30 }
 0x7b0   :  { %v683_v59 = vsel %vm117_vm1, %v682_v57, -inf }
 0x7b1   :  { %684 = vmax.xlane.f32.xlu0 %v683_v59 }
 0x7b2   :  { %v650_v60 = vpop.f32.mrf.mxu0 }
 0x7b3   :  { %v653_v61 = vadd.f32 %v650_v60, %v563_v58 }
 0x7ba   :  { %v769_v62 = vpop.f32.mrf.mxu0 }
 0x7bb   :  { %v772_v63 = vsel %vm1123_vm2, %v769_v62, -1e+30 }
 0x7bc   :  { %v773_v0 = vsel %vm117_vm1, %v772_v63, -inf }
 0x7bd   :  { %774 = vmax.xlane.f32.xlu2 %v773_v0 }
 0x7c5   :  { %784 = vrot.lane.b32.xlu0 %v1142_v31, %s1056_s13 }
 0x824   :  { %v685_v2 = vpop.xlane.xlu0 %684 }
 0x825   :  { %v686_v3 = vsub.f32 %v682_v57, %v685_v2 }
 0x827   :  { %v687_v4 = vmul.f32 1.442695, %v686_v3 }
 0x829   :  { %931 = vpow2.f32 %v687_v4 }
 0x82f   :  { %v932_v5 = vpop.eup %931 }
 0x830   :  { %v775_v6 = vpop.xlane.xlu2 %774  ;;  %v689_v8 = vsel %vm117_vm1, %v932_v5, 0.0 }
 0x831   :  { %v776_v7 = vsub.f32 %v772_v63, %v775_v6  ;;  %690 = vadd.xlane.f32.xlu2 %v689_v8 }
 0x833   :  { %v777_v9 = vmul.f32 1.442695, %v776_v7 }
 0x835   :  { %933 = vpow2.f32 %v777_v9 }
 0x837   :  { %v785_v15 = vpop.permute.xlu0 %784 }
 0x838   :  { %805 = vmatpush.msra.mxu2 %v785_v15 }
 0x83b   :  { %v934_v10 = vpop.eup %933 }
 0x83c   :  { %v779_v11 = vsel %vm117_vm1, %v934_v10, 0.0 }
 0x83d   :  { %780 = vadd.xlane.f32.xlu1 %v779_v11 }
 0x856   :  { %694 = vrot.lane.b32.xlu1 %v1142_v31, %s1055_s12 }
 0x8a4   :  { %v691_v16 = vpop.xlane.xlu2 %690 }
 0x8b0   :  { %v781_v12 = vpop.xlane.xlu1 %780 }
 0x8b1   :  { %935 = vrcp.f32 %v781_v12 }
 0x8b2   :  { %937 = vrcp.f32 %v691_v16 }
 0x8b7   :  { %v936_v13 = vpop.eup %935 }
 0x8b8   :  { %v783_v14 = vmul.f32 %v936_v13, %v934_v10  ;;  %v938_v17 = vpop.eup %937 }
 0x8b9   :  { %v693_v18 = vmul.f32 %v938_v17, %v932_v5 }
 0x8ba   :  { %887 = vmatmul.msk.f32.vlgmr.msra.gmra.mxu2 %vm117_vm1, %v783_v14 }
 0x8c8   :  { %v695_v19 = vpop.permute.xlu1 %694 }
 0x8c9   :  { %715 = vmatpush.msrb.mxu3 %v695_v19 }
 0x8ca   :  { %883 = vmatmul.msk.f32.vlgmr.msrb.gmra.mxu3 %vm117_vm1, %v693_v18 }
 0x8cb   :  { %828 = vmatpush.msra.mxu3 %v1176_v1 }
 0x93d   :  { %v807_v20 = vpop.f32.mrf.mxu2 }
 0x93e   :  { %888 = vmatmul.msk.f32.vlgmr.msra.gmra.mxu3 %vm117_vm1, %v807_v20 }
 0x94d   :  { %v717_v31 = vpop.f32.mrf.mxu3 }
 0x94e   :  { %884 = vmatmul.msk.f32.vlgmr.msrb.gmra.mxu1 %vm117_vm1, %v717_v31 }
 0x9c1   :  { %v830_v23 = vpop.f32.mrf.mxu3 }
 0x9cb   :  { %v740_v21 = vpop.f32.mrf.mxu1 }
 0x9cc   :  { %v743_v22 = vadd.f32 %v740_v21, %v653_v61 }
 0x9ce   :  { %v833_v24 = vadd.f32 %v830_v23, %v743_v22 }
 0x9d0   :  { %834 = vst.msk [vmem:[#allocation8 + $0x8] sm:$0xff] %vm71_vm0, %v833_v24 }
 0x9d1   :  { %847 = dma.vmem_to_hbm [thread:$0]  %s840_s16, 256, %s842_s19, [#allocation4], %s1042_s23, %s1042_s23, %s1043_s24  }
 0x9d2   :  { %1039 = dma.done.wait [#allocation4], 256  }
 0x9d3   :  { %1040 = vsyncadd [#allocation4], 4294967040 }
 0x9d4   :  { %852 = vsyncpa [#allocation3], 1 }
 0x9d5   :  { %853 = vsyncpa [#allocation6], 1 }
 0x9d6   :  { %854 = vsyncpa [#allocation4], 1 }

</bundles_post_ra>
